<compile_context>
chip_gen: v7x
topology: tpu7x:2x2x1
jax: 0.10.0
libtpu: 0.0.40
codegen_flags: <defaults>
</compile_context>

<pallas_src>
import functools

import numpy as np
import jax
import jax.numpy as jnp
from jax import lax
from jax.experimental import pallas as pl
from jax.experimental.pallas import tpu as pltpu


def _ope_loss_kernel(z1_ref, z2_ref, labels_ref, proto1_ref, proto2_ref, loss_ref,
                     acc_ref, *, n_total, proto_limit, temperature):
    tile_n, D = z1_ref.shape
    c_pad = proto1_ref.shape[0]
    two_c = 2 * c_pad
    i = pl.program_id(0)
    n_tiles = pl.num_programs(0)

    @pl.when(i == 0)
    def _init():
        acc_ref[...] = jnp.zeros_like(acc_ref)

    # ---- per-tile accumulation of class sums + counts (single fused matmul) ----
    z1 = z1_ref[...].astype(jnp.float32)          # (tile_n, D)
    z2 = z2_ref[...].astype(jnp.float32)
    labels = labels_ref[...]                       # (1, tile_n) int32

    if n_total % tile_n == 0:
        rb_f = jnp.ones((tile_n, 1), jnp.float32)
    else:
        # last tile is partial: zero out-of-range rows so padded garbage
        # (values and labels) contributes nothing to sums or counts.
        row_idx = lax.broadcasted_iota(jnp.int32, (tile_n, 1), 0) + i * tile_n
        rb = row_idx < n_total
        rb_f = rb.astype(jnp.float32)
        z1 = jnp.where(rb, z1, 0.0)
        z2 = jnp.where(rb, z2, 0.0)

    class_iota = lax.broadcasted_iota(jnp.int32, (c_pad, tile_n), 0)
    onehot = (labels == class_iota).astype(jnp.float32)          # (c_pad, tile_n)
    x_cat = jnp.concatenate([z1, z2, rb_f], axis=1)              # (tile_n, 2D+1)
    acc_ref[...] += jnp.dot(onehot, x_cat,
                            preferred_element_type=jnp.float32)  # (c_pad, 2D+1)

    # ---- finalize: prototypes, normalization, contrastive loss ----------------
    @pl.when(i == n_tiles - 1)
    def _finalize():
        acc = acc_ref[...]
        sums1 = acc[:, :D]
        sums2 = acc[:, D:2 * D]
        counts = acc[:, 2 * D:]                                  # (c_pad, 1)

        has_count = counts > 0.0
        inv_counts = jnp.where(has_count,
                               1.0 / jnp.where(has_count, counts, 1.0), 0.0)
        proto1 = sums1 * inv_counts
        proto2 = sums2 * inv_counts
        proto1_ref[...] = proto1
        proto2_ref[...] = proto2

        # validity: torch's `abs(proto1).sum(1) > 0`, restricted to classes
        # below proto_limit (only_old_proto slicing). Padded classes have
        # count 0 and are automatically invalid.
        abs_sum = jnp.sum(jnp.abs(proto1), axis=1, keepdims=True)
        class_idx = lax.broadcasted_iota(jnp.int32, (c_pad, 1), 0)
        valid = (abs_sum > 0.0) & (class_idx < proto_limit)      # (c_pad, 1)
        valid_f = valid.astype(jnp.float32)

        # L2 normalize (F.normalize eps=1e-12) via rsqrt, fold 1/sqrt(T) so the
        # similarity matmul directly yields logits/T. Invalid rows -> zeros.
        inv_sqrt_t = 1.0 / float(temperature) ** 0.5
        sq1 = jnp.sum(proto1 * proto1, axis=1, keepdims=True)
        sq2 = jnp.sum(proto2 * proto2, axis=1, keepdims=True)
        scale1 = jnp.where(valid, lax.rsqrt(jnp.maximum(sq1, 1e-24)) * inv_sqrt_t, 0.0)
        scale2 = jnp.where(valid, lax.rsqrt(jnp.maximum(sq2, 1e-24)) * inv_sqrt_t, 0.0)
        q1 = proto1 * scale1
        q2 = proto2 * scale2

        z = jnp.concatenate([q1, q2], axis=0)                    # (2c_pad, D), 8-aligned
        valid2 = jnp.concatenate([valid, valid], axis=0)         # (2c_pad, 1)
        valid2_f = jnp.concatenate([valid_f, valid_f], axis=0)

        # pairwise similarities already scaled by 1/T (MXU).
        logits = lax.dot_general(z, z, (((1,), (1,)), ((), ())),
                                 preferred_element_type=jnp.float32)

        # Unmasked row max == masked row max for valid rows: invalid columns are
        # exactly 0 while each valid row's diagonal is 1/T > 0.
        row_max = jnp.max(logits, axis=1, keepdims=True)
        shifted = logits - row_max

        # denominator mask: valid column AND off-diagonal (outer product of the
        # validity vector avoids any vector transpose).
        valid_pair = lax.dot_general(valid2_f, valid2_f, (((1,), (1,)), ((), ())),
                                     preferred_element_type=jnp.float32)
        row_i = lax.broadcasted_iota(jnp.int32, (two_c, two_c), 0)
        col_j = lax.broadcasted_iota(jnp.int32, (two_c, two_c), 1)
        den_mask = valid_pair * (row_i != col_j).astype(jnp.float32)
        denom = jnp.sum(jnp.exp(shifted) * den_mask, axis=1, keepdims=True)
        denom = jnp.where(valid2, denom, 1.0)

        # positive logit = diag(q1·q2ᵀ) (includes 1/T); identical for row i and
        # row c_pad+i, so no (2C,2C) pos_mask / log_prob is materialized.
        pos = jnp.sum(q1 * q2, axis=1, keepdims=True)            # (c_pad, 1)
        pos2 = jnp.concatenate([pos, pos], axis=0)               # (2c_pad, 1)
        log_prob_pos = pos2 - row_max - jnp.log(denom)
        log_prob_pos = jnp.where(valid2, log_prob_pos, 0.0)

        num_valid = jnp.sum(valid2_f)
        total = jnp.sum(log_prob_pos)
        # NOTE: torch would NaN when num_valid == 0; we return 0.0 instead.
        loss_ref[0, 0] = -total / jnp.maximum(num_valid, 1.0)


def ope_loss(z1, z2, labels, task_id, *, class_per_task, temperature=0.5,
             only_old_proto=False, is_new=False, max_tile_n=512):
    """Pallas implementation of OPELoss.forward. Returns (loss, proto_z1, proto_z2)."""
    N, D = z1.shape
    end_i = (task_id + 1) * class_per_task
    if (not only_old_proto) or is_new:
        proto_limit = end_i
    else:
        proto_limit = task_id * class_per_task

    # pad the class (sublane) axis to a multiple of 8 so [q1; q2] concat and the
    # (2C,2C) logits are layout-aligned; padded classes are masked out.
    c_pad = max(8, ((end_i + 7) // 8) * 8)
    tile_n = N if N <= max_tile_n else max_tile_n
    num_tiles = pl.cdiv(N, tile_n)

    labels2d = jnp.asarray(labels).astype(jnp.int32).reshape(1, N)

    kernel = functools.partial(
        _ope_loss_kernel,
        n_total=N,
        proto_limit=proto_limit,
        temperature=float(temperature),
    )

    proto1, proto2, loss = pl.pallas_call(
        kernel,
        grid=(num_tiles,),
        in_specs=[
            pl.BlockSpec((tile_n, D), lambda i: (i, 0)),
            pl.BlockSpec((tile_n, D), lambda i: (i, 0)),
            pl.BlockSpec((1, tile_n), lambda i: (0, i)),
        ],
        out_specs=(
            pl.BlockSpec((c_pad, D), lambda i: (0, 0)),
            pl.BlockSpec((c_pad, D), lambda i: (0, 0)),
            pl.BlockSpec(memory_space=pltpu.MemorySpace.SMEM),
        ),
        out_shape=(
            jax.ShapeDtypeStruct((c_pad, D), jnp.float32),
            jax.ShapeDtypeStruct((c_pad, D), jnp.float32),
            jax.ShapeDtypeStruct((1, 1), jnp.float32),
        ),
        scratch_shapes=[pltpu.VMEM((c_pad, 2 * D + 1), jnp.float32)],
        compiler_params=pltpu.CompilerParams(
            dimension_semantics=("arbitrary",)),
    )(z1, z2, labels2d)
    return loss[0, 0], proto1[:end_i], proto2[:end_i]


def _ref_ope_loss(z1, z2, labels, task_id, class_per_task, temperature=0.5,
                  only_old_proto=False, is_new=False):
    """Pure-numpy re-implementation of the PyTorch module for verification."""
    z1 = np.asarray(z1, np.float64)
    z2 = np.asarray(z2, np.float64)
    labels = np.asarray(labels)
    end_i = (task_id + 1) * class_per_task
    dim = z1.shape[1]
    p1 = np.zeros((end_i, dim))
    p2 = np.zeros((end_i, dim))
    for i in range(end_i):
        idx = labels == i
        if not idx.any():
            continue
        p1[i] = z1[idx].mean(0)
        p2[i] = z2[idx].mean(0)
    if (not only_old_proto) or is_new:
        a, b = p1, p2
    else:
        a, b = p1[:task_id * class_per_task], p2[:task_id * class_per_task]
    nz = np.abs(a).sum(1) > 0
    a, b = a[nz], b[nz]
    a = a / np.maximum(np.linalg.norm(a, axis=1, keepdims=True), 1e-12)
    b = b / np.maximum(np.linalg.norm(b, axis=1, keepdims=True), 1e-12)
    cn = a.shape[0]
    z = np.concatenate([a, b], 0)
    logits = z @ z.T / temperature
    logits = logits - logits.max(1, keepdims=True)
    pos = np.zeros((2 * cn, 2 * cn), bool)
    for i in range(cn):
        pos[i, cn + i] = True
        pos[cn + i, i] = True
    lmask = np.ones_like(pos, float)
    np.fill_diagonal(lmask, 0.0)
    expl = np.exp(logits) * lmask
    logp = logits - np.log(expl.sum(1, keepdims=True))
    mlp = (pos * logp).sum(1) / pos.sum(1)
    return -mlp.mean(), p1, p2


if __name__ == "__main__":
    key = jax.random.PRNGKey(0)
    N, D = 8, 32
    class_per_task = 2
    task_id = 1                      # -> end_i = 4 classes
    k1, k2 = jax.random.split(key)
    z1 = jax.random.normal(k1, (N, D), dtype=jnp.float32)
    z2 = jax.random.normal(k2, (N, D), dtype=jnp.float32)
    # class 2 intentionally absent to exercise the nonZeroRows masking path
    labels = jnp.array([0, 0, 1, 1, 3, 3, 0, 1], dtype=jnp.int32)

    loss, proto1, proto2 = ope_loss(z1, z2, labels, task_id,
                                    class_per_task=class_per_task,
                                    temperature=0.5)
    jax.block_until_ready((loss, proto1, proto2))

    ref_loss, ref_p1, ref_p2 = _ref_ope_loss(np.asarray(z1), np.asarray(z2),
                                             np.asarray(labels), task_id,
                                             class_per_task, temperature=0.5)
    assert np.allclose(np.asarray(loss), ref_loss, atol=1e-4), (loss, ref_loss)
    assert np.allclose(np.asarray(proto1), ref_p1, atol=1e-5)
    assert np.allclose(np.asarray(proto2), ref_p2, atol=1e-5)

    print("KERNEL_OK")
</pallas_src>

<mosaic_0001>
module attributes {stable_mosaic.version = 11 : i64} {
  func.func @_ope_loss_kernel(%arg0: i32, %arg1: memref<8x32xf32, #tpu.memory_space<vmem>>, %arg2: memref<8x32xf32, #tpu.memory_space<vmem>>, %arg3: memref<1x8xi32, #tpu.memory_space<vmem>>, %arg4: memref<8x32xf32, #tpu.memory_space<vmem>>, %arg5: memref<8x32xf32, #tpu.memory_space<vmem>>, %arg6: memref<1x1xf32, #tpu.memory_space<smem>>, %arg7: memref<8x65xf32, #tpu.memory_space<vmem>>) attributes {dimension_semantics = [#tpu.dimension_semantics<arbitrary>], iteration_bounds = array<i64: 1>, scalar_prefetch = 0 : i64, scratch_operands = 1 : i64, tpu.core_type = #tpu.core_type<tc>, window_params = [{transform_indices = @transform_0, window_bounds = array<i64: 8, 32>}, {transform_indices = @transform_1, window_bounds = array<i64: 8, 32>}, {transform_indices = @transform_2, window_bounds = array<i64: 1, 8>}, {pipeline_mode = #tpu.pipeline_mode<synchronous>, transform_indices = @transform_3, window_bounds = array<i64: 8, 32>}, {pipeline_mode = #tpu.pipeline_mode<synchronous>, transform_indices = @transform_4, window_bounds = array<i64: 8, 32>}, {transform_indices = @transform_5, window_bounds = array<i64: 1, 1>}]} {
    %c0_i32 = arith.constant 0 : i32
    %0 = arith.cmpi eq, %arg0, %c0_i32 : i32
    %1 = arith.extui %0 : i1 to i32
    %c0_i32_0 = arith.constant 0 : i32
    %2 = arith.cmpi ne, %1, %c0_i32_0 : i32
    scf.if %2 {
      %cst_13 = arith.constant 0.000000e+00 : f32
      %20 = vector.broadcast %cst_13 : f32 to vector<8x65xf32>
      %c0_14 = arith.constant 0 : index
      %c0_15 = arith.constant 0 : index
      %21 = vector.load %arg7[%c0_14, %c0_15] : memref<8x65xf32, #tpu.memory_space<vmem>>, vector<8x65xf32>
      tpu.vector_store %arg7[%c0_14, %c0_15], %20 {strides = array<i32>} : memref<8x65xf32, #tpu.memory_space<vmem>>, vector<8x65xf32>,
    } else {
    }
    %c0 = arith.constant 0 : index
    %c0_1 = arith.constant 0 : index
    %3 = vector.load %arg1[%c0, %c0_1] : memref<8x32xf32, #tpu.memory_space<vmem>>, vector<8x32xf32>
    %c0_2 = arith.constant 0 : index
    %c0_3 = arith.constant 0 : index
    %4 = vector.load %arg2[%c0_2, %c0_3] : memref<8x32xf32, #tpu.memory_space<vmem>>, vector<8x32xf32>
    %c0_4 = arith.constant 0 : index
    %c0_5 = arith.constant 0 : index
    %5 = vector.load %arg3[%c0_4, %c0_5] : memref<1x8xi32, #tpu.memory_space<vmem>>, vector<1x8xi32>
    %cst = arith.constant 1.000000e+00 : f32
    %6 = vector.broadcast %cst : f32 to vector<8x1xf32>
    %7 = tpu.iota {dimensions = array<i32: 0>} : vector<8x8xi32>
    %8 = vector.broadcast %5 : vector<1x8xi32> to vector<8x8xi32>
    %9 = arith.cmpi eq, %8, %7 : vector<8x8xi32>
    %10 = arith.extui %9 : vector<8x8xi1> to vector<8x8xi32>
    %11 = arith.sitofp %10 : vector<8x8xi32> to vector<8x8xf32>
    %12 = tpu.concatenate %3, %4, %6 in 1 : vector<8x32xf32>, vector<8x32xf32>, vector<8x1xf32> -> vector<8x65xf32>
    %c0_6 = arith.constant 0 : index
    %c0_7 = arith.constant 0 : index
    %13 = vector.load %arg7[%c0_6, %c0_7] : memref<8x65xf32, #tpu.memory_space<vmem>>, vector<8x65xf32>
    %cst_8 = arith.constant dense<0.000000e+00> : vector<8x65xf32>
    %14 = tpu.matmul %11, %12, %cst_8 {dimension_numbers = #tpu.dot_dimension_numbers<[1], [0], [0], [1], [0, 0, 1, 1], [], []>} : vector<8x8xf32>, vector<8x65xf32>, vector<8x65xf32> -> vector<8x65xf32>
    %15 = arith.addf %13, %14 : vector<8x65xf32>
    %c0_9 = arith.constant 0 : index
    %c0_10 = arith.constant 0 : index
    %16 = vector.load %arg7[%c0_9, %c0_10] : memref<8x65xf32, #tpu.memory_space<vmem>>, vector<8x65xf32>
    tpu.vector_store %arg7[%c0_9, %c0_10], %15 {strides = array<i32>} : memref<8x65xf32, #tpu.memory_space<vmem>>, vector<8x65xf32>,
    %c0_i32_11 = arith.constant 0 : i32
    %17 = arith.cmpi eq, %arg0, %c0_i32_11 : i32
    %18 = arith.extui %17 : i1 to i32
    %c0_i32_12 = arith.constant 0 : i32
    %19 = arith.cmpi ne, %18, %c0_i32_12 : i32
    scf.if %19 {
      %c0_13 = arith.constant 0 : index
      %c0_14 = arith.constant 0 : index
      %20 = vector.load %arg7[%c0_13, %c0_14] : memref<8x65xf32, #tpu.memory_space<vmem>>, vector<8x65xf32>
      %21 = vector.extract_strided_slice %20 {offsets = [0, 0], sizes = [8, 32], strides = [1, 1]} : vector<8x65xf32> to vector<8x32xf32>
      %22 = vector.extract_strided_slice %20 {offsets = [0, 32], sizes = [8, 32], strides = [1, 1]} : vector<8x65xf32> to vector<8x32xf32>
      %23 = vector.extract_strided_slice %20 {offsets = [0, 64], sizes = [8, 1], strides = [1, 1]} : vector<8x65xf32> to vector<8x1xf32>
      %cst_15 = arith.constant 0.000000e+00 : f32
      %24 = vector.broadcast %cst_15 : f32 to vector<8x1xf32>
      %25 = arith.cmpf ogt, %23, %24 : vector<8x1xf32>
      %cst_16 = arith.constant 1.000000e+00 : f32
      %26 = vector.broadcast %cst_16 : f32 to vector<8x1xf32>
      %27 = arith.select %25, %23, %26 : vector<8x1xi1>, vector<8x1xf32>
      %cst_17 = arith.constant 1.000000e+00 : f32
      %28 = vector.broadcast %cst_17 : f32 to vector<8x1xf32>
      %29 = arith.divf %28, %27 : vector<8x1xf32>
      %cst_18 = arith.constant 0.000000e+00 : f32
      %30 = vector.broadcast %cst_18 : f32 to vector<8x1xf32>
      %31 = arith.select %25, %29, %30 : vector<8x1xi1>, vector<8x1xf32>
      %32 = vector.broadcast %31 : vector<8x1xf32> to vector<8x32xf32>
      %33 = arith.mulf %21, %32 : vector<8x32xf32>
      %34 = vector.broadcast %31 : vector<8x1xf32> to vector<8x32xf32>
      %35 = arith.mulf %22, %34 : vector<8x32xf32>
      %c0_19 = arith.constant 0 : index
      %c0_20 = arith.constant 0 : index
      %36 = vector.load %arg4[%c0_19, %c0_20] : memref<8x32xf32, #tpu.memory_space<vmem>>, vector<8x32xf32>
      tpu.vector_store %arg4[%c0_19, %c0_20], %33 {strides = array<i32>} : memref<8x32xf32, #tpu.memory_space<vmem>>, vector<8x32xf32>,
      %c0_21 = arith.constant 0 : index
      %c0_22 = arith.constant 0 : index
      %37 = vector.load %arg5[%c0_21, %c0_22] : memref<8x32xf32, #tpu.memory_space<vmem>>, vector<8x32xf32>
      tpu.vector_store %arg5[%c0_21, %c0_22], %35 {strides = array<i32>} : memref<8x32xf32, #tpu.memory_space<vmem>>, vector<8x32xf32>,
      %38 = math.absf %33 : vector<8x32xf32>
      %cst_23 = arith.constant dense<0.000000e+00> : vector<8xf32>
      %39 = vector.multi_reduction <add>, %38, %cst_23 [1] : vector<8x32xf32> to vector<8xf32>
      %40 = vector.shape_cast %39 : vector<8xf32> to vector<8x1xf32>
      %41 = tpu.iota {dimensions = array<i32: 0>} : vector<8x1xi32>
      %cst_24 = arith.constant 0.000000e+00 : f32
      %42 = vector.broadcast %cst_24 : f32 to vector<8x1xf32>
      %43 = arith.cmpf ogt, %40, %42 : vector<8x1xf32>
      %c4_i32 = arith.constant 4 : i32
      %44 = vector.broadcast %c4_i32 : i32 to vector<8x1xi32>
      %45 = arith.cmpi slt, %41, %44 : vector<8x1xi32>
      %46 = arith.andi %43, %45 : vector<8x1xi1>
      %47 = arith.extui %46 : vector<8x1xi1> to vector<8x1xi32>
      %48 = arith.sitofp %47 : vector<8x1xi32> to vector<8x1xf32>
      %49 = arith.mulf %33, %33 : vector<8x32xf32>
      %cst_25 = arith.constant dense<0.000000e+00> : vector<8xf32>
      %50 = vector.multi_reduction <add>, %49, %cst_25 [1] : vector<8x32xf32> to vector<8xf32>
      %51 = vector.shape_cast %50 : vector<8xf32> to vector<8x1xf32>
      %52 = arith.mulf %35, %35 : vector<8x32xf32>
      %cst_26 = arith.constant dense<0.000000e+00> : vector<8xf32>
      %53 = vector.multi_reduction <add>, %52, %cst_26 [1] : vector<8x32xf32> to vector<8xf32>
      %54 = vector.shape_cast %53 : vector<8xf32> to vector<8x1xf32>
      %cst_27 = arith.constant 1.000000e-24 : f32
      %55 = vector.broadcast %cst_27 : f32 to vector<8x1xf32>
      %56 = arith.maximumf %51, %55 : vector<8x1xf32>
      %57 = math.rsqrt %56 : vector<8x1xf32>
      %cst_28 = arith.constant 1.41421354 : f32
      %58 = vector.broadcast %cst_28 : f32 to vector<8x1xf32>
      %59 = arith.mulf %57, %58 : vector<8x1xf32>
      %cst_29 = arith.constant 0.000000e+00 : f32
      %60 = vector.broadcast %cst_29 : f32 to vector<8x1xf32>
      %61 = arith.select %46, %59, %60 : vector<8x1xi1>, vector<8x1xf32>
      %cst_30 = arith.constant 1.000000e-24 : f32
      %62 = vector.broadcast %cst_30 : f32 to vector<8x1xf32>
      %63 = arith.maximumf %54, %62 : vector<8x1xf32>
      %64 = math.rsqrt %63 : vector<8x1xf32>
      %cst_31 = arith.constant 1.41421354 : f32
      %65 = vector.broadcast %cst_31 : f32 to vector<8x1xf32>
      %66 = arith.mulf %64, %65 : vector<8x1xf32>
      %cst_32 = arith.constant 0.000000e+00 : f32
      %67 = vector.broadcast %cst_32 : f32 to vector<8x1xf32>
      %68 = arith.select %46, %66, %67 : vector<8x1xi1>, vector<8x1xf32>
      %69 = vector.broadcast %61 : vector<8x1xf32> to vector<8x32xf32>
      %70 = arith.mulf %33, %69 : vector<8x32xf32>
      %71 = vector.broadcast %68 : vector<8x1xf32> to vector<8x32xf32>
      %72 = arith.mulf %35, %71 : vector<8x32xf32>
      %73 = tpu.concatenate %70, %72 in 0 : vector<8x32xf32>, vector<8x32xf32> -> vector<16x32xf32>
      %74 = tpu.concatenate %46, %46 in 0 : vector<8x1xi1>, vector<8x1xi1> -> vector<16x1xi1>
      %75 = tpu.concatenate %48, %48 in 0 : vector<8x1xf32>, vector<8x1xf32> -> vector<16x1xf32>
      %cst_33 = arith.constant dense<0.000000e+00> : vector<16x16xf32>
      %76 = tpu.matmul %73, %73, %cst_33 {dimension_numbers = #tpu.dot_dimension_numbers<[1], [1], [0], [0], [0, 0, 1, 0], [], []>} : vector<16x32xf32>, vector<16x32xf32>, vector<16x16xf32> -> vector<16x16xf32>
      %cst_34 = arith.constant dense<0xFF800000> : vector<16xf32>
      %77 = vector.multi_reduction <maximumf>, %76, %cst_34 [1] : vector<16x16xf32> to vector<16xf32>
      %78 = vector.shape_cast %77 : vector<16xf32> to vector<16x1xf32>
      %79 = vector.broadcast %78 : vector<16x1xf32> to vector<16x16xf32>
      %80 = arith.subf %76, %79 : vector<16x16xf32>
      %cst_35 = arith.constant dense<0.000000e+00> : vector<16x16xf32>
      %81 = tpu.matmul %75, %75, %cst_35 {dimension_numbers = #tpu.dot_dimension_numbers<[1], [1], [0], [0], [0, 0, 1, 0], [], []>} : vector<16x1xf32>, vector<16x1xf32>, vector<16x16xf32> -> vector<16x16xf32>
      %82 = tpu.iota {dimensions = array<i32: 0>} : vector<16x16xi32>
      %83 = tpu.iota {dimensions = array<i32: 1>} : vector<16x16xi32>
      %84 = arith.cmpi ne, %82, %83 : vector<16x16xi32>
      %85 = arith.extui %84 : vector<16x16xi1> to vector<16x16xi32>
      %86 = arith.sitofp %85 : vector<16x16xi32> to vector<16x16xf32>
      %87 = arith.mulf %81, %86 : vector<16x16xf32>
      %88 = math.exp %80 : vector<16x16xf32>
      %89 = arith.mulf %88, %87 : vector<16x16xf32>
      %cst_36 = arith.constant dense<0.000000e+00> : vector<16xf32>
      %90 = vector.multi_reduction <add>, %89, %cst_36 [1] : vector<16x16xf32> to vector<16xf32>
      %91 = vector.shape_cast %90 : vector<16xf32> to vector<16x1xf32>
      %cst_37 = arith.constant 1.000000e+00 : f32
      %92 = vector.broadcast %cst_37 : f32 to vector<16x1xf32>
      %93 = arith.select %74, %91, %92 : vector<16x1xi1>, vector<16x1xf32>
      %94 = arith.mulf %70, %72 : vector<8x32xf32>
      %cst_38 = arith.constant dense<0.000000e+00> : vector<8xf32>
      %95 = vector.multi_reduction <add>, %94, %cst_38 [1] : vector<8x32xf32> to vector<8xf32>
      %96 = vector.shape_cast %95 : vector<8xf32> to vector<8x1xf32>
      %97 = tpu.concatenate %96, %96 in 0 : vector<8x1xf32>, vector<8x1xf32> -> vector<16x1xf32>
      %98 = arith.subf %97, %78 : vector<16x1xf32>
      %99 = math.log %93 : vector<16x1xf32>
      %100 = arith.subf %98, %99 : vector<16x1xf32>
      %cst_39 = arith.constant 0.000000e+00 : f32
      %101 = vector.broadcast %cst_39 : f32 to vector<16x1xf32>
      %102 = arith.select %74, %100, %101 : vector<16x1xi1>, vector<16x1xf32>
      %103 = vector.shape_cast %75 : vector<16x1xf32> to vector<1x16x1xf32>
      %cst_40 = arith.constant dense<0.000000e+00> : vector<1xf32>
      %104 = vector.multi_reduction <add>, %103, %cst_40 [1, 2] : vector<1x16x1xf32> to vector<1xf32>
      %105 = vector.shape_cast %104 : vector<1xf32> to vector<1x1x1xf32>
      %106 = vector.extract %105[0, 0, 0] : f32 from vector<1x1x1xf32>
      %107 = vector.shape_cast %102 : vector<16x1xf32> to vector<1x16x1xf32>
      %cst_41 = arith.constant dense<0.000000e+00> : vector<1xf32>
      %108 = vector.multi_reduction <add>, %107, %cst_41 [1, 2] : vector<1x16x1xf32> to vector<1xf32>
      %109 = vector.shape_cast %108 : vector<1xf32> to vector<1x1x1xf32>
      %110 = vector.extract %109[0, 0, 0] : f32 from vector<1x1x1xf32>
      %cst_42 = arith.constant 0.000000e+00 : f32
      %111 = arith.subf %cst_42, %110 : f32
      %cst_43 = arith.constant 1.000000e+00 : f32
      %112 = arith.maximumf %106, %cst_43 : f32
      %113 = arith.divf %111, %112 : f32
      %c0_44 = arith.constant 0 : index
      %c0_45 = arith.constant 0 : index
      %114 = memref.load %arg6[%c0_44, %c0_45] : memref<1x1xf32, #tpu.memory_space<smem>>
      memref.store %113, %arg6[%c0_44, %c0_45] : memref<1x1xf32, #tpu.memory_space<smem>>
    } else {
    }
    return
  }
  func.func @transform_0(%arg0: i32) -> (i32, i32) {
    %c0_i32 = arith.constant 0 : i32
    %c0_i32_0 = arith.constant 0 : i32
    return %arg0, %c0_i32 : i32, i32
  }
  func.func @transform_1(%arg0: i32) -> (i32, i32) {
    %c0_i32 = arith.constant 0 : i32
    %c0_i32_0 = arith.constant 0 : i32
    return %arg0, %c0_i32 : i32, i32
  }
  func.func @transform_2(%arg0: i32) -> (i32, i32) {
    %c0_i32 = arith.constant 0 : i32
    %c0_i32_0 = arith.constant 0 : i32
    return %c0_i32, %arg0 : i32, i32
  }
  func.func @transform_3(%arg0: i32) -> (i32, i32) {
    %c0_i32 = arith.constant 0 : i32
    %c0_i32_0 = arith.constant 0 : i32
    %c0_i32_1 = arith.constant 0 : i32
    return %c0_i32, %c0_i32_0 : i32, i32
  }
  func.func @transform_4(%arg0: i32) -> (i32, i32) {
    %c0_i32 = arith.constant 0 : i32
    %c0_i32_0 = arith.constant 0 : i32
    %c0_i32_1 = arith.constant 0 : i32
    return %c0_i32, %c0_i32_0 : i32, i32
  }
  func.func @transform_5(%arg0: i32) -> (i32, i32) {
    %c0_i32 = arith.constant 0 : i32
    %c0_i32_0 = arith.constant 0 : i32
    %c0_i32_1 = arith.constant 0 : i32
    return %c0_i32, %c0_i32_0 : i32, i32
  }
}

</mosaic_0001>

<bundles_post_ra>
// kernel: tpu_custom_call.1
= control target key start
LH: loop header
LB: loop body
LE: loop exit
PB: predicated region body
PF: predicated region fallthrough
CT: control target
= control target key end

     0   :  { %11 = vsyncpa [#allocation4], 0  ;;  %s861_s0 = inlined_call_operand.hbm [shape: f32[8,32], index: 0, kind: input, shape index: {}]   ;;  %s862_s1 = inlined_call_operand.hbm [shape: f32[8,32], index: 1, kind: input, shape index: {}]   ;;  %s863_s2 = inlined_call_operand.vmem [shape: s32[1,8], index: 2, kind: input, shape index: {}]   ;;  %s864_s3 = inlined_call_operand.hbm [shape: f32[8,32], index: 3, kind: output, shape index: {0}]   ;;  %s865_s4 = inlined_call_operand.hbm [shape: f32[8,32], index: 4, kind: output, shape index: {1}]   ;;  %s866_s5 = inlined_call_operand.hbm [shape: f32[1,1], index: 5, kind: output, shape index: {2}]  }
   0x1   :  { %12 = vsyncpa [#allocation8], 0 }
   0x2   :  { %13 = vsyncpa [#allocation5], 0 }
   0x3   :  { %14 = vsyncpa [#allocation11], 0 }
   0x4   :  { %15 = vsyncpa [#allocation6], 0  ;;  %s681_s18 = smov [#allocation3]   ;;  %s682_s20 = smov [#allocation7]  }
   0x5   :  { %s22_s19 = sshll.u32 %s681_s18, 4  ;;  %s32_s21 = sshll.u32 %s682_s20, 4  ;;  %s23_s19 = int_to_ptr.vmem [resolvable:$true] %s22_s19  ;;  %s33_s21 = int_to_ptr.vmem [resolvable:$true] %s32_s21 }
   0x6   :  { %s573_s24 = scalar_lea.hbm %s861_s0, 128 }
   0x7   :  { %p574_p0 = scmp.ne.s32.totalorder %s861_s0, %s573_s24  ;;  %p577_p1 = scmp.lt.u32.totalorder %s573_s24, %s861_s0 }
   0x9   :  { %p579_p2 = pnand %p577_p1, %p574_p0 }
   0xb   :  { %582 = shalt.err (!%p579_p2)
}
   0xc   :  { %s583_s29 = scalar_lea.vmem %s23_s19, 128  ;;  %p588_p4 = scmp.lt.s32.totalorder %s23_s19, %s23_s19 }
   0xd   :  { %p584_p3 = scmp.ne.s32.totalorder %s23_s19, %s583_s29  ;;  %p589_p5 = scmp.lt.s32.totalorder %s583_s29, %s583_s29 }
   0xf   :  { %p590_p6 = por %p589_p5, %p588_p4 }
  0x11   :  { %p591_p7 = pnand %p590_p6, %p584_p3 }
  0x13   :  { %594 = shalt.err (!%p591_p7)
}
  0x14   :  { %25 = dma.hbm_to_vmem [thread:$0]  %s861_s0, 128, %s23_s19, [#allocation4]  }
  0x15   :  { %s595_s9 = scalar_lea.hbm %s862_s1, 128 }
  0x16   :  { %p596_p8 = scmp.ne.s32.totalorder %s862_s1, %s595_s9  ;;  %p599_p9 = scmp.lt.u32.totalorder %s595_s9, %s862_s1 }
  0x18   :  { %p601_p10 = pnand %p599_p9, %p596_p8 }
  0x1a   :  { %604 = shalt.err (!%p601_p10)
}
  0x1b   :  { %s605_s14 = scalar_lea.vmem %s33_s21, 128  ;;  %p610_p12 = scmp.lt.s32.totalorder %s33_s21, %s33_s21 }
  0x1c   :  { %p606_p11 = scmp.ne.s32.totalorder %s33_s21, %s605_s14  ;;  %p611_p13 = scmp.lt.s32.totalorder %s605_s14, %s605_s14 }
  0x1e   :  { %p612_p0 = por %p611_p13, %p610_p12 }
  0x20   :  { %p613_p1 = pnand %p612_p0, %p606_p11 }
  0x22   :  { %616 = shalt.err (!%p613_p1)
}
  0x23   :  { %35 = dma.hbm_to_vmem [thread:$0]  %s862_s1, 128, %s33_s21, [#allocation8]  }
  0x24   :  { %671 = dma.done.wait [#allocation4], 128  }
  0x25   :  { %672 = vsyncadd [#allocation4], 4294967168 }
  0x26   :  { %673 = dma.done.wait [#allocation8], 128  }
  0x27   :  { %674 = vsyncadd [#allocation8], 4294967168  ;;  %v683_v0 = vmov 0.0   ;;  %vm48_vm0 = vcmask 531456   ;;  %vm684_vm1 = vmmov 0   ;;  %v51_v1 = vld [vmem:[#allocation7] sm:$0xff]  ;;  %v53_v2 = vlaneseq }
  0x28   :  { %508 = vmatprep.subr.mxu0 %v683_v0  ;;  %510 = vmatprep.mubr.msk.f32.mxu0 %vm684_vm1, %v683_v0  ;;  %49 = vst.msk [vmem:[#allocation2] sm:$0xff] %vm48_vm0, %v683_v0  ;;  %s685_s16 = smov 32   ;;  %v484_v4 = vld [vmem:[%s863_s2] ss:$0 sm:$0xff]  ;;  %v50_v5 = vld [vmem:[#allocation3] sm:$0xff]  ;;  %vm66_vm2 = vcmask 261120  }
  0x29   :  { %63 = vrot.lane.b32.xlu0 %v51_v1, %s685_s16  ;;  %v751_v3 = vshrl.u32 %v53_v2, 7  ;;  %vm68_vm4 = vcmask 523264   ;;  %vm71_vm5 = vcmask 64512   ;;  %v686_v10 = vmov 64   ;;  %s687_s2 = smov 96   ;;  %vm528_vm12 = vmpackc.low %vm66_vm2, %vm66_vm2  ;;  %s688_s18 = smov [#allocation9]  }
  0x2a   :  { %556 = vset.pattern.permute.xlu0 %v686_v10  ;;  %vm291_vm8 = vcmask 7168   ;;  %vm282_vm13 = vcmask 130048   ;;  %v372_v54 = vand.u32 127, %v53_v2  ;;  %s447_s19 = sshll.u32 %s688_s18, 4  ;;  %s689_s20 = smov [#allocation10]   ;;  %s448_s19 = int_to_ptr.vmem [resolvable:$true] %s447_s19 }
  0x2b   :  { %vm59_vm3 = vcmp.eq.s32.totalorder %v484_v4, %v751_v3  ;;  %vm174_vm7 = vcmp.lt.s32.totalorder %v751_v3, 4  ;;  %vm534_vm11 = vmpackc.low %vm291_vm8, %vm291_vm8  ;;  %v370_v58 = vadd.s32 8, %v751_v3  ;;  %s457_s21 = sshll.u32 %s689_s20, 4  ;;  %s617_s22 = scalar_lea.vmem %s448_s19, 128  ;;  %s458_s21 = int_to_ptr.vmem [resolvable:$true] %s457_s21 }
  0x2c   :  { %v485_v8 = vsel %vm59_vm3, 1.0, %v683_v0  ;;  %vm373_vm14 = vcmp.ne.s32.totalorder %v751_v3, %v372_v54  ;;  %p618_p2 = scmp.ne.s32.totalorder %s448_s19, %s617_s22  ;;  %p622_p3 = scmp.lt.s32.totalorder %s448_s19, %s448_s19 }
  0x2d   :  { %v496_v59 = vsel %vm373_vm14, 1.0, %v683_v0  ;;  %vm374_vm15 = vcmp.ne.s32.totalorder %v370_v58, %v372_v54  ;;  %p623_p4 = scmp.lt.s32.totalorder %s617_s22, %s617_s22 }
  0x2e   :  { %v497_v62 = vsel %vm374_vm15, 1.0, %v683_v0 }
  0x2f   :  { %v70_v11 = vld [vmem:[#allocation2] sm:$0xff]  ;;  %p624_p5 = por %p623_p4, %p622_p3 }
  0x31   :  { %p625_p6 = pnand %p624_p5, %p618_p2 }
  0x9b   :  { %v64_v6 = vpop.permute.xlu0 %63 }
  0x9c   :  { %v67_v7 = vsel %vm66_vm2, %v50_v5, %v64_v6 }
  0x9d   :  { %v69_v9 = vsel %vm68_vm4, %v67_v7, 1.0 }
  0x9e   :  { %509 = vmatpush3.msra.mxu0 %v69_v9 }
  0x9f   :  { %511 = vmatmul.mubr.msk.f32.vlgmr.msra.gmra.mrb[0].mxu0 %vm71_vm5, %v485_v8 }
 0x172   :  { %v141_v12 = vpop.f32.mrb[0].mxu0 }
 0x173   :  { %v145_v13 = vadd.f32 %v141_v12, %v70_v11  ;;  %v512_v14 = vpop.f32.mrb[1].mxu0 }
 0x175   :  { %147 = vst.msk [vmem:[#allocation2] sm:$0xff] %vm48_vm0, %v145_v13 }
 0x17c   :  { %v151_v15 = vld [vmem:[#allocation2] sm:$0xff] }
 0x17d   :  { %vm152_vm6 = vcmp.gt.f32.partialorder %v151_v15, 0.0 }
 0x17e   :  { %v153_v16 = vsel %vm152_vm6, %v151_v15, 1.0 }
 0x17f   :  { %557 = vrcp.f32 %v153_v16 }
 0x189   :  { %v558_v17 = vpop.eup %557 }
 0x18a   :  { %v156_v18 = vsel %vm152_vm6, %v558_v17, 0.0 }
 0x18b   :  { %159 = vperm.xlu0 %556, %v156_v18  }
 0x20a   :  { %v160_v19 = vpop.permute.xlu0 %159 }
 0x20b   :  { %v760_v20 = vmul.f32 %v160_v19, %v151_v15 }
 0x20d   :  { %163 = vst.msk [vmem:[#allocation9] sm:$0xff] %vm66_vm2, %v760_v20  ;;  %v178_v21 = vmul.f32 %v760_v20, %v760_v20  ;;  %v169_v22 = vand.u32 2147483647, %v760_v20 }
 0x20f   :  { %183 = vrot.lane.b32.xlu1 %v178_v21, %s687_s2  ;;  %v170_v23 = vsel %vm66_vm2, %v169_v22, 0.0  ;;  %v179_v26 = vsel %vm66_vm2, %v178_v21, 0.0 }
 0x210   :  { %171 = vadd.xlane.f32.xlu0 %v170_v23 }
 0x281   :  { %v184_v24 = vpop.permute.xlu1 %183 }
 0x282   :  { %v186_v25 = vsel %vm66_vm2, %v184_v24, 0.0 }
 0x283   :  { %187 = vadd.xlane.f32.xlu1 %v186_v25 }
 0x287   :  { %180 = vadd.xlane.f32.xlu1 %v179_v26 }
 0x29d   :  { %v172_v27 = vpop.xlane.xlu0 %171 }
 0x29e   :  { %vm173_vm9 = vcmp.gt.f32.partialorder %v172_v27, 0.0 }
 0x29f   :  { %vm772_vm10 = vmand %vm173_vm9, %vm174_vm7 }
 0x2a0   :  { %v779_v29 = vsel %vm772_vm10, 1.0, %v683_v0 }
 0x2a1   :  { %524 = vmatprep.mubr.msk.f32.mxu0 %vm291_vm8, %v779_v29  ;;  %v533_v30 = vpack.c.bf16 %v779_v29, %v779_v29  ;;  %v410_v8 = vsel %vm291_vm8, %v779_v29, 0.0 }
 0x2a2   :  { %v411_v9 = vadd.f32 %v410_v8, %v410_v8 }
 0x2a3   :  { %535 = vmatprep.subr.msk.bf16.mxu0 %vm534_vm11, %v533_v30 }
 0x2a4   :  { %538 = vmatpush3.bf16.xpose.msk.msra.mxu0 %vm534_vm11, %v533_v30 }
 0x2ab   :  { %525 = vmatmul.mubr.msk.f32.vlgmr.msra.gmra.mrb[2].mxu0 %vm291_vm8, %v779_v29 }
 0x310   :  { %v188_v31 = vpop.xlane.xlu1 %187 }
 0x311   :  { %v193_v32 = vmax.f32 %v188_v31, 1e-24 }
 0x313   :  { %559 = vrsqrt.f32 %v193_v32 }
 0x314   :  { %v181_v33 = vpop.xlane.xlu1 %180 }
 0x315   :  { %v189_v34 = vmax.f32 %v181_v33, 1e-24 }
 0x317   :  { %561 = vrsqrt.f32 %v189_v34 }
 0x31d   :  { %v560_v35 = vpop.eup %559 }
 0x31e   :  { %v195_v36 = vmul.f32 1.4142135, %v560_v35 }
 0x320   :  { %v196_v37 = vsel %vm772_vm10, %v195_v36, 0.0 }
 0x321   :  { %v562_v38 = vpop.eup %561  ;;  %v198_v39 = vmul.f32 %v196_v37, %v760_v20 }
 0x322   :  { %v191_v40 = vmul.f32 1.4142135, %v562_v38 }
 0x323   :  { %200 = vrot.lane.b32.xlu0 %v198_v39, %s687_s2 }
 0x324   :  { %v192_v41 = vsel %vm772_vm10, %v191_v40, 0.0 }
 0x325   :  { %v197_v42 = vmul.f32 %v192_v41, %v760_v20 }
 0x327   :  { %517 = vmatprep.mubr.msk.f32.mxu1 %vm66_vm2, %v197_v42 }
 0x37e   :  { %v526_v43 = vpop.f32.mrb[2].mxu0 }
 0x37f   :  { %v361_v44 = vpop.f32.mrb[3].mxu0  ;;  %v380_v1 = vmul.f32 %v526_v43, %v497_v62 }
 0x380   :  { %v379_v60 = vmul.f32 %v496_v59, %v361_v44 }
 0x395   :  { %v201_v45 = vpop.permute.xlu0 %200 }
 0x396   :  { %v527_v46 = vpack.c.bf16 %v201_v45, %v197_v42  ;;  %v396_v7 = vmul.f32 %v201_v45, %v197_v42 }
 0x398   :  { %529 = vmatprep.subr.msk.bf16.mxu1 %vm528_vm12, %v527_v46  ;;  %v397_v3 = vsel %vm66_vm2, %v396_v7, 0.0 }
 0x399   :  { %532 = vmatpush3.bf16.xpose.msk.msra.mxu1 %vm528_vm12, %v527_v46 }
 0x3a0   :  { %518 = vmatmul.mubr.msk.f32.vlgmr.msra.gmra.mrb[0].mxu1 %vm66_vm2, %v201_v45 }
 0x473   :  { %v519_v47 = vpop.f32.mrb[0].mxu1 }
 0x474   :  { %v273_v48 = vpop.f32.mrb[1].mxu1  ;;  %v286_v50 = vsel %vm282_vm13, %v519_v47, -inf }
 0x475   :  { %v283_v49 = vsel %vm282_vm13, %v273_v48, -inf }
 0x476   :  { %284 = vmax.xlane.f32.xlu1 %v283_v49 }
 0x47a   :  { %287 = vmax.xlane.f32.xlu1 %v286_v50 }
 0x503   :  { %v285_v51 = vpop.xlane.xlu1 %284 }
 0x504   :  { %v289_v52 = vsub.f32 %v273_v48, %v285_v51 }
 0x506   :  { %v381_v53 = vmul.f32 1.442695, %v289_v52 }
 0x507   :  { %v288_v55 = vpop.xlane.xlu1 %287 }
 0x508   :  { %563 = vpow2.f32 %v381_v53  ;;  %v290_v56 = vsub.f32 %v519_v47, %v288_v55 }
 0x50a   :  { %v383_v57 = vmul.f32 1.442695, %v290_v56 }
 0x50c   :  { %565 = vpow2.f32 %v383_v57 }
 0x512   :  { %v564_v61 = vpop.eup %563 }
 0x513   :  { %v385_v63 = vmul.f32 %v564_v61, %v379_v60 }
 0x515   :  { %v387_v2 = vsel %vm282_vm13, %v385_v63, 0.0 }
 0x516   :  { %v566_v4 = vpop.eup %565  ;;  %388 = vadd.xlane.f32.xlu1 %v387_v2 }
 0x517   :  { %v386_v5 = vmul.f32 %v566_v4, %v380_v1 }
 0x519   :  { %v390_v6 = vsel %vm282_vm13, %v386_v5, 0.0 }
 0x51a   :  { %391 = vadd.xlane.f32.xlu1 %v390_v6 }
 0x51e   :  { %398 = vadd.xlane.f32.xlu1 %v397_v3 }
 0x522   :  { %412 = vadd.xlane.f32.xlu1 %v411_v9 }
 0x533   :  { %165 = vrot.lane.b32.xlu1 %v760_v20, %s687_s2 }
 0x5a3   :  { %v389_v0 = vpop.xlane.xlu1 %388 }
 0x5a4   :  { %v393_v10 = vsel %vm772_vm10, %v389_v0, 1.0 }
 0x5a5   :  { %567 = vlog2.f32 %v393_v10 }
 0x5a7   :  { %v392_v11 = vpop.xlane.xlu1 %391 }
 0x5a8   :  { %v394_v12 = vsel %vm772_vm10, %v392_v11, 1.0 }
 0x5a9   :  { %569 = vlog2.f32 %v394_v12 }
 0x5ab   :  { %v399_v13 = vpop.xlane.xlu1 %398 }
 0x5ac   :  { %v400_v17 = vsub.f32 %v399_v13, %v285_v51  ;;  %v401_v24 = vsub.f32 %v399_v13, %v288_v55 }
 0x5af   :  { %v568_v14 = vpop.eup %567  ;;  %v413_v15 = vpop.xlane.xlu1 %412 }
 0x5b0   :  { %v403_v16 = vmul.f32 0.6931472, %v568_v14  ;;  %v414_v18 = vrot.slane %v413_v15, 4 }
 0x5b2   :  { %v406_v19 = vsub.f32 %v400_v17, %v403_v16  ;;  %v415_v21 = vadd.f32 %v414_v18, %v413_v15 }
 0x5b3   :  { %v570_v22 = vpop.eup %569  ;;  %v166_v20 = vpop.permute.xlu1 %165 }
 0x5b4   :  { %v405_v23 = vmul.f32 0.6931472, %v570_v22  ;;  %v416_v25 = vrot.slane %v415_v21, 2  ;;  %168 = vst.msk [vmem:[#allocation10] sm:$0xff] %vm66_vm2, %v166_v20  ;;  %v408_v27 = vsel %vm772_vm10, %v406_v19, 0.0 }
 0x5b5   :  { %v421_v32 = vsel %vm291_vm8, %v408_v27, 0.0 }
 0x5b6   :  { %v407_v26 = vsub.f32 %v401_v24, %v405_v23  ;;  %v417_v29 = vadd.f32 %v416_v25, %v415_v21 }
 0x5b8   :  { %v409_v30 = vsel %vm772_vm10, %v407_v26, 0.0  ;;  %v418_v31 = vrot.slane %v417_v29, 1 }
 0x5b9   :  { %v422_v33 = vsel %vm291_vm8, %v409_v30, 0.0 }
 0x5ba   :  { %v423_v34 = vadd.f32 %v422_v33, %v421_v32  ;;  %v419_v35 = vadd.f32 %v418_v31, %v417_v29 }
 0x5bc   :  { %424 = vadd.xlane.f32.xlu0 %v423_v34  ;;  %539 = vpush %v419_v35 }
 0x5bd   :  { %628 = shalt.err (!%p625_p6)
}
 0x5be   :  { %s629_s25 = scalar_lea.hbm %s864_s3, 128 }
 0x5bf   :  { %p630_p7 = scmp.ne.s32.totalorder %s864_s3, %s629_s25  ;;  %p633_p8 = scmp.lt.u32.totalorder %s629_s25, %s864_s3 }
 0x5c1   :  { %p635_p9 = pnand %p633_p8, %p630_p7 }
 0x5c3   :  { %638 = shalt.err (!%p635_p9)
}
 0x5c4   :  { %450 = dma.vmem_to_hbm [thread:$0]  %s448_s19, 128, %s864_s3, [#allocation5]  }
 0x5c5   :  { %s639_s7 = scalar_lea.vmem %s458_s21, 128  ;;  %p644_p11 = scmp.lt.s32.totalorder %s458_s21, %s458_s21 }
 0x5c6   :  { %p640_p10 = scmp.ne.s32.totalorder %s458_s21, %s639_s7  ;;  %p645_p12 = scmp.lt.s32.totalorder %s639_s7, %s639_s7 }
 0x5c8   :  { %p646_p13 = por %p645_p12, %p644_p11 }
 0x5ca   :  { %p647_p0 = pnand %p646_p13, %p640_p10 }
 0x5cc   :  { %650 = shalt.err (!%p647_p0)
}
 0x5cd   :  { %s651_s10 = scalar_lea.hbm %s865_s4, 128 }
 0x5ce   :  { %p652_p1 = scmp.ne.s32.totalorder %s865_s4, %s651_s10  ;;  %p655_p2 = scmp.lt.u32.totalorder %s651_s10, %s865_s4 }
 0x5d0   :  { %p657_p3 = pnand %p655_p2, %p652_p1 }
 0x5d2   :  { %660 = shalt.err (!%p657_p3)
}
 0x5d3   :  { %460 = dma.vmem_to_hbm [thread:$0]  %s458_s21, 128, %s865_s4, [#allocation11]  }
 0x5d4   :  { %s690_s16 = smov 1.0   ;;  %s661_s21 = scalar_lea.hbm %s866_s5, 16 }
 0x5d5   :  { %p662_p4 = scmp.ne.s32.totalorder %s866_s5, %s661_s21  ;;  %p665_p5 = scmp.lt.u32.totalorder %s661_s21, %s866_s5 }
 0x5d7   :  { %p667_p6 = pnand %p665_p5, %p662_p4 }
 0x5ed   :  { %s540_s15 = spop %539 }
 0x5ee   :  { %s434_s1 = smax.f32 %s690_s16, %s540_s15 }
 0x5ef   :  { %v435_v28 = vstv %s434_s1 }
 0x5f0   :  { %571 = vrcp.f32 %v435_v28 }
 0x5fa   :  { %v572_v43 = vpop.eup %571 }
 0x649   :  { %v425_v36 = vpop.xlane.xlu0 %424 }
 0x64a   :  { %v426_v37 = vrot.slane %v425_v36, 4 }
 0x64c   :  { %v427_v38 = vadd.f32 %v426_v37, %v425_v36 }
 0x64e   :  { %v428_v39 = vrot.slane %v427_v38, 2 }
 0x650   :  { %v429_v40 = vadd.f32 %v428_v39, %v427_v38 }
 0x652   :  { %v430_v41 = vrot.slane %v429_v40, 1 }
 0x654   :  { %v431_v42 = vadd.f32 %v430_v41, %v429_v40 }
 0x656   :  { %541 = vpush %v431_v42 }
 0x657   :  { %543 = vpush %v572_v43 }
 0x687   :  { %s542_s17 = spop %541 }
 0x688   :  { %s433_s2 = ssub.f32 0.0, %s542_s17  ;;  %s544_s18 = spop %543 }
 0x68a   :  { %s438_s19 = smul.f32 %s544_s18, %s433_s2 }
 0x68c   :  { %440 = sst [smem:[#allocation12]] %s438_s19 }
 0x68d   :  { %670 = shalt.err (!%p667_p6)
}
 0x68e   :  { %s691_s26 = smov [#allocation12]  }
 0x68f   :  { %468 = dma.smem_to_hbm %s691_s26, 16, %s866_s5, [#allocation6]  }
 0x690   :  { %675 = dma.done.wait [#allocation5], 128  }
 0x691   :  { %676 = vsyncadd [#allocation5], 4294967168 }
 0x692   :  { %677 = dma.done.wait [#allocation11], 128  }
 0x693   :  { %678 = vsyncadd [#allocation11], 4294967168 }
 0x694   :  { %679 = dma.done.wait [#allocation6], 16  }
 0x695   :  { %680 = vsyncadd [#allocation6], 4294967280 }
 0x696   :  { %478 = sfence }
 0x697   :  { %479 = vsyncpa [#allocation4], 1 }
 0x698   :  { %480 = vsyncpa [#allocation8], 1 }
 0x699   :  { %481 = vsyncpa [#allocation5], 1 }
 0x69a   :  { %482 = vsyncpa [#allocation11], 1 }
 0x69b   :  { %483 = vsyncpa [#allocation6], 1 }

</bundles_post_ra>
